<compile_context>
chip_gen: v6e
topology: v6e:2x2x1
jax: 0.10.0
libtpu: 0.0.40
codegen_flags: <defaults>
</compile_context>

<pallas_src>
import functools

import jax
import jax.numpy as jnp
import numpy as np
from jax import lax
from jax.experimental import pallas as pl
from jax.experimental.pallas import tpu as pltpu

NEG_SLOPE = 0.01  # PyTorch nn.LeakyReLU default negative_slope


def _round_up(v, m):
    return (v + m - 1) // m * m


def _plan(Cin, L, layer_cfg, cout_list):
    """Host-side (numpy) planning: per-layer shapes, sublane-aligned row layouts and the
    per-batch {0,1} selection matrix fusing AvgPool + zero re-pad for the next layer."""
    plan = []
    L_in, C_in = L, Cin
    n = len(layer_cfg)
    for li, ((K, s, p, kp, sp), Cout) in enumerate(zip(layer_cfg, cout_list)):
        Lpad = L_in + 2 * p                       # logical padded length
        Rp_in = _round_up(Lpad, 8)                # sublane-aligned row count of the input
        Lc = (Lpad - K) // s + 1                  # strided conv output length
        has_pool = (kp > 0) and (sp > 0)
        kp_e, sp_e = (kp, sp) if has_pool else (1, 1)
        Lp = (Lc - kp_e) // sp_e + 1              # after AvgPool (== Lc when no pool)
        last = (li == n - 1)
        if last:
            p_next = 0
            R_out = Lp                            # final pooled rows, no re-pad
        else:
            p_next = layer_cfg[li + 1][2]
            R_out = _round_up(Lp + 2 * p_next, 8)  # next layer's aligned padded rows
        # Per-batch selection matrix in {0,1}: row r of the output gathers the pool-window
        # members of pooled position jp and scatters them into the next layer's zero-padded,
        # sublane-aligned row layout.  Padding / alignment rows stay all-zero -> the matmul
        # writes exact zeros there.  The 1/kp scale is applied after the matmul.
        P = np.zeros((R_out, Lc), dtype=np.float32)
        for jp in range(Lp):
            r = jp if last else (p_next + jp)
            for m in range(kp_e):
                P[r, sp_e * jp + m] = 1.0
        plan.append(dict(K=K, s=s, Lc=Lc, Cin=C_in, Cout=Cout, Rp_in=Rp_in,
                         R_out=R_out, Lp=Lp, last=last, inv_pool=1.0 / kp_e, P=P))
        L_in, C_in = Lp, Cout
    return plan


def _make_kernel(plan, compute_dtype):
    """One batch element per grid step; the whole layer stack stays in VMEM."""
    n = len(plan)

    def kernel(*refs):
        x_ref = refs[0]                    # (Rp0, Cin) f32, zero-padded + aligned
        o_ref = refs[1 + 3 * n]            # (Lp_last, Cout_last) f32
        scratch = refs[2 + 3 * n:]         # per non-last layer: (R_out, Cout) f32
        cur = x_ref
        for li, lp in enumerate(plan):
            w_ref = refs[1 + 3 * li]       # (K, Cin, Cout)   compute_dtype
            b_ref = refs[2 + 3 * li]       # (1, Cout)        f32
            p_ref = refs[3 + 3 * li]       # (R_out, Lc)      compute_dtype, {0,1}
            K, s, Lc = lp["K"], lp["s"], lp["Lc"]

            # Strided conv: tap k contributes padded rows k, k+s, k+2s, ... .  Read exactly
            # those rows (strided sublane load) and matmul against the per-tap weights (MXU,
            # f32 accumulation).  No stride-1 rows are computed and discarded.
            y = None
            for k in range(K):
                sl = pl.ds(k, Lc) if s == 1 else pl.ds(k, Lc, stride=s)
                t = jnp.dot(cur[sl, :].astype(compute_dtype), w_ref[k],
                            preferred_element_type=jnp.float32)
                y = t if y is None else y + t
            y = y + b_ref[...]
            y = jnp.maximum(y, NEG_SLOPE * y)          # LeakyReLU(0.01), one VPU op

            # Fused AvgPool + zero re-pad for the next layer: one {0,1} selection matmul
            # (MXU) then a scalar 1/kp scale (kept out of the matrix so bf16 stays exact).
            z = jnp.dot(p_ref[...], y.astype(compute_dtype),
                        preferred_element_type=jnp.float32)
            if lp["inv_pool"] != 1.0:
                z = z * lp["inv_pool"]

            if li == n - 1:
                o_ref[...] = z.astype(o_ref.dtype)
            else:
                scratch[li][...] = z                   # fully overwritten every step
                cur = scratch[li]

    return kernel


@functools.partial(jax.jit, static_argnames=("layer_cfg", "compute_dtype"))
def conv_encoder_forward(x, params, layer_cfg, compute_dtype=jnp.float32):
    """x: (B, Cin, L) NCL.  params: sequence of (w:(Cout,Cin,K), b:(Cout,)).
       layer_cfg: tuple of (k, stride, pad, pool_k, pool_stride) per layer (static).
       compute_dtype: dtype of the MXU operands (f32 or bf16); accumulation is always f32."""
    B, Cin, L = x.shape
    cout_list = tuple(int(w.shape[0]) for w, _ in params)
    plan = _plan(Cin, L, layer_cfg, cout_list)

    # Cheap XLA glue (single pass, no gathers): zero-pad to the sublane-aligned padded
    # length and go channel-last: (B, Cin, L) -> (B, Rp0, Cin).
    p0 = layer_cfg[0][2]
    Rp0 = plan[0]["Rp_in"]
    xp = jnp.pad(x, ((0, 0), (0, 0), (p0, Rp0 - L - p0)))
    xp = jnp.transpose(xp, (0, 2, 1)).astype(jnp.float32)

    inputs = [xp]
    in_specs = [pl.BlockSpec((None, Rp0, Cin), lambda b: (b, 0, 0))]
    scratch_shapes = []
    for (w, b), lp in zip(params, plan):
        wt = jnp.transpose(w, (2, 1, 0)).astype(compute_dtype)      # (K, Cin, Cout)
        inputs.append(wt)
        in_specs.append(pl.BlockSpec(wt.shape, lambda b: (0, 0, 0)))
        bb = b.reshape(1, -1).astype(jnp.float32)                   # (1, Cout)
        inputs.append(bb)
        in_specs.append(pl.BlockSpec(bb.shape, lambda b: (0, 0)))
        Pm = jnp.asarray(lp["P"], dtype=compute_dtype)              # (R_out, Lc), {0,1}
        inputs.append(Pm)
        in_specs.append(pl.BlockSpec(Pm.shape, lambda b: (0, 0)))
        if not lp["last"]:
            scratch_shapes.append(pltpu.VMEM((lp["R_out"], lp["Cout"]), jnp.float32))

    last = plan[-1]
    Lp, Cout = last["Lp"], last["Cout"]
    out = pl.pallas_call(
        _make_kernel(plan, compute_dtype),
        out_shape=jax.ShapeDtypeStruct((B, Lp, Cout), jnp.float32),
        grid_spec=pltpu.PrefetchScalarGridSpec(
            num_scalar_prefetch=0,
            grid=(B,),                                   # batch axis: pipelined + megacore
            in_specs=in_specs,
            out_specs=pl.BlockSpec((None, Lp, Cout), lambda b: (b, 0, 0)),
            scratch_shapes=scratch_shapes,
        ),
        compiler_params=pltpu.CompilerParams(
            dimension_semantics=("parallel",),
            vmem_limit_bytes=32 * 1024 * 1024,           # explicit; safe on v5e/v6e/v7x
        ),
    )(*inputs)

    # Encoder.forward: torch.flatten(start_dim=1) of the final NCL tensor (B, Cout, Lp).
    # Tiny epilogue on a (B, Lp, Cout) slab; see TODO(synk) at the top of the file.
    return jnp.transpose(out, (0, 2, 1)).reshape(B, -1)


def reference_forward(x, params, layer_cfg):
    """Pure-JAX reference mirroring the PyTorch module (for the correctness check)."""
    for (w, b), (_, s, p, kp, sp) in zip(params, layer_cfg):
        y = lax.conv_general_dilated(
            x, w, window_strides=(s,), padding=[(p, p)],
            dimension_numbers=('NCH', 'OIH', 'NCH'))
        y = y + b[None, :, None]
        y = jnp.where(y >= 0.0, y, NEG_SLOPE * y)
        if kp > 0 and sp > 0:
            y = lax.reduce_window(y, 0.0, lax.add,
                                  (1, 1, kp), (1, 1, sp), 'VALID') / kp
        x = y
    return x.reshape(x.shape[0], -1)


if __name__ == "__main__":
    key = jax.random.PRNGKey(0)

    # Shapes consistent with convEncoder(in_channels=4, hidden_dims=[8,16], dimension=1)
    B, Cin, L = 2, 4, 64
    hidden_dims = [8, 16]
    kernel_sizes = [3, 3]
    strides = [2, 2]
    paddings = [1, 1]
    pool_kernels = [3, 3]
    pool_strides = [2, 2]

    params = []
    layer_cfg = []
    h0 = Cin
    for h, k, s, p, kp, sp in zip(hidden_dims, kernel_sizes, strides,
                                  paddings, pool_kernels, pool_strides):
        key, kw, kb = jax.random.split(key, 3)
        w = jax.random.normal(kw, (h, h0, k), jnp.float32) * 0.1
        b = jax.random.normal(kb, (h,), jnp.float32) * 0.1
        params.append((w, b))
        layer_cfg.append((k, s, p, kp, sp))
        h0 = h
    params = tuple(params)
    layer_cfg = tuple(layer_cfg)

    key, kx = jax.random.split(key)
    x = jax.random.normal(kx, (B, Cin, L), jnp.float32)

    ref = jax.block_until_ready(reference_forward(x, list(params), list(layer_cfg)))

    # f32 path: tight correctness check against the f32 reference.
    out = jax.block_until_ready(conv_encoder_forward(x, params, layer_cfg=layer_cfg))
    assert out.shape == (B, hidden_dims[-1] * 3), out.shape  # (2, 48) for L=64
    np.testing.assert_allclose(np.asarray(out), np.asarray(ref), rtol=1e-4, atol=5e-5)

    # bf16 MXU path (review item): same kernel, bf16 operands, f32 accumulation.
    out_bf16 = jax.block_until_ready(
        conv_encoder_forward(x, params, layer_cfg=layer_cfg, compute_dtype=jnp.bfloat16))
    np.testing.assert_allclose(np.asarray(out_bf16), np.asarray(ref), rtol=3e-2, atol=3e-2)

    print("KERNEL_OK")
</pallas_src>

<mosaic_0001>
module attributes {stable_mosaic.version = 11 : i64} {
  func.func @kernel(%arg0: i32, %arg1: memref<1x72x4xf32, #tpu.memory_space<vmem>>, %arg2: memref<3x4x8xf32, #tpu.memory_space<vmem>>, %arg3: memref<1x8xf32, #tpu.memory_space<vmem>>, %arg4: memref<24x32xf32, #tpu.memory_space<vmem>>, %arg5: memref<3x8x16xf32, #tpu.memory_space<vmem>>, %arg6: memref<1x16xf32, #tpu.memory_space<vmem>>, %arg7: memref<3x8xf32, #tpu.memory_space<vmem>>, %arg8: memref<1x3x16xf32, #tpu.memory_space<vmem>>, %arg9: memref<24x8xf32, #tpu.memory_space<vmem>>) attributes {dimension_semantics = [#tpu.dimension_semantics<parallel>], iteration_bounds = array<i64: 2>, scalar_prefetch = 0 : i64, scratch_operands = 1 : i64, tpu.core_type = #tpu.core_type<tc>, window_params = [{transform_indices = @transform_0, window_bounds = array<i64: 1, 72, 4>}, {pipeline_mode = #tpu.pipeline_mode<synchronous>, transform_indices = @transform_1, window_bounds = array<i64: 3, 4, 8>}, {pipeline_mode = #tpu.pipeline_mode<synchronous>, transform_indices = @transform_2, window_bounds = array<i64: 1, 8>}, {pipeline_mode = #tpu.pipeline_mode<synchronous>, transform_indices = @transform_3, window_bounds = array<i64: 24, 32>}, {pipeline_mode = #tpu.pipeline_mode<synchronous>, transform_indices = @transform_4, window_bounds = array<i64: 3, 8, 16>}, {pipeline_mode = #tpu.pipeline_mode<synchronous>, transform_indices = @transform_5, window_bounds = array<i64: 1, 16>}, {pipeline_mode = #tpu.pipeline_mode<synchronous>, transform_indices = @transform_6, window_bounds = array<i64: 3, 8>}, {transform_indices = @transform_7, window_bounds = array<i64: 1, 3, 16>}]} {
    %c0 = arith.constant 0 : index
    %c0_0 = arith.constant 0 : index
    %c0_1 = arith.constant 0 : index
    %0 = tpu.strided_load %arg1[%c0, %c0_0, %c0_1] {strides = array<i32: 1, 2, 1>} : memref<1x72x4xf32, #tpu.memory_space<vmem>>, vector<1x32x4xf32>
    %1 = vector.shape_cast %0 : vector<1x32x4xf32> to vector<32x4xf32>
    %c0_2 = arith.constant 0 : index
    %c0_3 = arith.constant 0 : index
    %c0_4 = arith.constant 0 : index
    %2 = vector.load %arg2[%c0_2, %c0_3, %c0_4] : memref<3x4x8xf32, #tpu.memory_space<vmem>>, vector<1x4x8xf32>
    %3 = vector.shape_cast %2 : vector<1x4x8xf32> to vector<4x8xf32>
    %cst = arith.constant dense<0.000000e+00> : vector<32x8xf32>
    %4 = tpu.matmul %1, %3, %cst {dimension_numbers = #tpu.dot_dimension_numbers<[1], [0], [0], [1], [0, 0, 1, 1], [], []>} : vector<32x4xf32>, vector<4x8xf32>, vector<32x8xf32> -> vector<32x8xf32>
    %c0_5 = arith.constant 0 : index
    %c1 = arith.constant 1 : index
    %c0_6 = arith.constant 0 : index
    %5 = tpu.strided_load %arg1[%c0_5, %c1, %c0_6] {strides = array<i32: 1, 2, 1>} : memref<1x72x4xf32, #tpu.memory_space<vmem>>, vector<1x32x4xf32>
    %6 = vector.shape_cast %5 : vector<1x32x4xf32> to vector<32x4xf32>
    %c1_7 = arith.constant 1 : index
    %c0_8 = arith.constant 0 : index
    %c0_9 = arith.constant 0 : index
    %7 = vector.load %arg2[%c1_7, %c0_8, %c0_9] : memref<3x4x8xf32, #tpu.memory_space<vmem>>, vector<1x4x8xf32>
    %8 = vector.shape_cast %7 : vector<1x4x8xf32> to vector<4x8xf32>
    %cst_10 = arith.constant dense<0.000000e+00> : vector<32x8xf32>
    %9 = tpu.matmul %6, %8, %cst_10 {dimension_numbers = #tpu.dot_dimension_numbers<[1], [0], [0], [1], [0, 0, 1, 1], [], []>} : vector<32x4xf32>, vector<4x8xf32>, vector<32x8xf32> -> vector<32x8xf32>
    %10 = arith.addf %4, %9 : vector<32x8xf32>
    %c0_11 = arith.constant 0 : index
    %c2 = arith.constant 2 : index
    %c0_12 = arith.constant 0 : index
    %11 = tpu.strided_load %arg1[%c0_11, %c2, %c0_12] {strides = array<i32: 1, 2, 1>} : memref<1x72x4xf32, #tpu.memory_space<vmem>>, vector<1x32x4xf32>
    %12 = vector.shape_cast %11 : vector<1x32x4xf32> to vector<32x4xf32>
    %c2_13 = arith.constant 2 : index
    %c0_14 = arith.constant 0 : index
    %c0_15 = arith.constant 0 : index
    %13 = vector.load %arg2[%c2_13, %c0_14, %c0_15] : memref<3x4x8xf32, #tpu.memory_space<vmem>>, vector<1x4x8xf32>
    %14 = vector.shape_cast %13 : vector<1x4x8xf32> to vector<4x8xf32>
    %cst_16 = arith.constant dense<0.000000e+00> : vector<32x8xf32>
    %15 = tpu.matmul %12, %14, %cst_16 {dimension_numbers = #tpu.dot_dimension_numbers<[1], [0], [0], [1], [0, 0, 1, 1], [], []>} : vector<32x4xf32>, vector<4x8xf32>, vector<32x8xf32> -> vector<32x8xf32>
    %16 = arith.addf %10, %15 : vector<32x8xf32>
    %c0_17 = arith.constant 0 : index
    %c0_18 = arith.constant 0 : index
    %17 = vector.load %arg3[%c0_17, %c0_18] : memref<1x8xf32, #tpu.memory_space<vmem>>, vector<1x8xf32>
    %18 = vector.broadcast %17 : vector<1x8xf32> to vector<32x8xf32>
    %19 = arith.addf %16, %18 : vector<32x8xf32>
    %cst_19 = arith.constant 0.00999999977 : f32
    %20 = vector.broadcast %cst_19 : f32 to vector<32x8xf32>
    %21 = arith.mulf %20, %19 : vector<32x8xf32>
    %22 = arith.maximumf %19, %21 : vector<32x8xf32>
    %c0_20 = arith.constant 0 : index
    %c0_21 = arith.constant 0 : index
    %23 = vector.load %arg4[%c0_20, %c0_21] : memref<24x32xf32, #tpu.memory_space<vmem>>, vector<24x32xf32>
    %cst_22 = arith.constant dense<0.000000e+00> : vector<24x8xf32>
    %24 = tpu.matmul %23, %22, %cst_22 {dimension_numbers = #tpu.dot_dimension_numbers<[1], [0], [0], [1], [0, 0, 1, 1], [], []>} : vector<24x32xf32>, vector<32x8xf32>, vector<24x8xf32> -> vector<24x8xf32>
    %cst_23 = arith.constant 0.333333343 : f32
    %25 = vector.broadcast %cst_23 : f32 to vector<24x8xf32>
    %26 = arith.mulf %24, %25 : vector<24x8xf32>
    %c0_24 = arith.constant 0 : index
    %c0_25 = arith.constant 0 : index
    %27 = vector.load %arg9[%c0_24, %c0_25] : memref<24x8xf32, #tpu.memory_space<vmem>>, vector<24x8xf32>
    tpu.vector_store %arg9[%c0_24, %c0_25], %26 {strides = array<i32>} : memref<24x8xf32, #tpu.memory_space<vmem>>, vector<24x8xf32>,
    %c0_26 = arith.constant 0 : index
    %c0_27 = arith.constant 0 : index
    %28 = tpu.strided_load %arg9[%c0_26, %c0_27] {strides = array<i32: 2, 1>} : memref<24x8xf32, #tpu.memory_space<vmem>>, vector<8x8xf32>
    %c0_28 = arith.constant 0 : index
    %c0_29 = arith.constant 0 : index
    %c0_30 = arith.constant 0 : index
    %29 = vector.load %arg5[%c0_28, %c0_29, %c0_30] : memref<3x8x16xf32, #tpu.memory_space<vmem>>, vector<1x8x16xf32>
    %30 = vector.shape_cast %29 : vector<1x8x16xf32> to vector<8x16xf32>
    %cst_31 = arith.constant dense<0.000000e+00> : vector<8x16xf32>
    %31 = tpu.matmul %28, %30, %cst_31 {dimension_numbers = #tpu.dot_dimension_numbers<[1], [0], [0], [1], [0, 0, 1, 1], [], []>} : vector<8x8xf32>, vector<8x16xf32>, vector<8x16xf32> -> vector<8x16xf32>
    %c1_32 = arith.constant 1 : index
    %c0_33 = arith.constant 0 : index
    %32 = tpu.strided_load %arg9[%c1_32, %c0_33] {strides = array<i32: 2, 1>} : memref<24x8xf32, #tpu.memory_space<vmem>>, vector<8x8xf32>
    %c1_34 = arith.constant 1 : index
    %c0_35 = arith.constant 0 : index
    %c0_36 = arith.constant 0 : index
    %33 = vector.load %arg5[%c1_34, %c0_35, %c0_36] : memref<3x8x16xf32, #tpu.memory_space<vmem>>, vector<1x8x16xf32>
    %34 = vector.shape_cast %33 : vector<1x8x16xf32> to vector<8x16xf32>
    %cst_37 = arith.constant dense<0.000000e+00> : vector<8x16xf32>
    %35 = tpu.matmul %32, %34, %cst_37 {dimension_numbers = #tpu.dot_dimension_numbers<[1], [0], [0], [1], [0, 0, 1, 1], [], []>} : vector<8x8xf32>, vector<8x16xf32>, vector<8x16xf32> -> vector<8x16xf32>
    %36 = arith.addf %31, %35 : vector<8x16xf32>
    %c2_38 = arith.constant 2 : index
    %c0_39 = arith.constant 0 : index
    %37 = tpu.strided_load %arg9[%c2_38, %c0_39] {strides = array<i32: 2, 1>} : memref<24x8xf32, #tpu.memory_space<vmem>>, vector<8x8xf32>
    %c2_40 = arith.constant 2 : index
    %c0_41 = arith.constant 0 : index
    %c0_42 = arith.constant 0 : index
    %38 = vector.load %arg5[%c2_40, %c0_41, %c0_42] : memref<3x8x16xf32, #tpu.memory_space<vmem>>, vector<1x8x16xf32>
    %39 = vector.shape_cast %38 : vector<1x8x16xf32> to vector<8x16xf32>
    %cst_43 = arith.constant dense<0.000000e+00> : vector<8x16xf32>
    %40 = tpu.matmul %37, %39, %cst_43 {dimension_numbers = #tpu.dot_dimension_numbers<[1], [0], [0], [1], [0, 0, 1, 1], [], []>} : vector<8x8xf32>, vector<8x16xf32>, vector<8x16xf32> -> vector<8x16xf32>
    %41 = arith.addf %36, %40 : vector<8x16xf32>
    %c0_44 = arith.constant 0 : index
    %c0_45 = arith.constant 0 : index
    %42 = vector.load %arg6[%c0_44, %c0_45] : memref<1x16xf32, #tpu.memory_space<vmem>>, vector<1x16xf32>
    %43 = vector.broadcast %42 : vector<1x16xf32> to vector<8x16xf32>
    %44 = arith.addf %41, %43 : vector<8x16xf32>
    %cst_46 = arith.constant 0.00999999977 : f32
    %45 = vector.broadcast %cst_46 : f32 to vector<8x16xf32>
    %46 = arith.mulf %45, %44 : vector<8x16xf32>
    %47 = arith.maximumf %44, %46 : vector<8x16xf32>
    %c0_47 = arith.constant 0 : index
    %c0_48 = arith.constant 0 : index
    %48 = vector.load %arg7[%c0_47, %c0_48] : memref<3x8xf32, #tpu.memory_space<vmem>>, vector<3x8xf32>
    %cst_49 = arith.constant dense<0.000000e+00> : vector<3x16xf32>
    %49 = tpu.matmul %48, %47, %cst_49 {dimension_numbers = #tpu.dot_dimension_numbers<[1], [0], [0], [1], [0, 0, 1, 1], [], []>} : vector<3x8xf32>, vector<8x16xf32>, vector<3x16xf32> -> vector<3x16xf32>
    %cst_50 = arith.constant 0.333333343 : f32
    %50 = vector.broadcast %cst_50 : f32 to vector<3x16xf32>
    %51 = arith.mulf %49, %50 : vector<3x16xf32>
    %c0_51 = arith.constant 0 : index
    %c0_52 = arith.constant 0 : index
    %c0_53 = arith.constant 0 : index
    %52 = vector.load %arg8[%c0_51, %c0_52, %c0_53] : memref<1x3x16xf32, #tpu.memory_space<vmem>>, vector<1x3x16xf32>
    %53 = vector.shape_cast %52 : vector<1x3x16xf32> to vector<3x16xf32>
    %54 = vector.shape_cast %51 : vector<3x16xf32> to vector<1x3x16xf32>
    tpu.vector_store %arg8[%c0_51, %c0_52, %c0_53], %54 {strides = array<i32>} : memref<1x3x16xf32, #tpu.memory_space<vmem>>, vector<1x3x16xf32>,
    return
  }
  func.func @transform_0(%arg0: i32) -> (i32, i32, i32) {
    %c0_i32 = arith.constant 0 : i32
    %c0_i32_0 = arith.constant 0 : i32
    %c0_i32_1 = arith.constant 0 : i32
    return %arg0, %c0_i32, %c0_i32_0 : i32, i32, i32
  }
  func.func @transform_1(%arg0: i32) -> (i32, i32, i32) {
    %c0_i32 = arith.constant 0 : i32
    %c0_i32_0 = arith.constant 0 : i32
    %c0_i32_1 = arith.constant 0 : i32
    %c0_i32_2 = arith.constant 0 : i32
    return %c0_i32, %c0_i32_0, %c0_i32_1 : i32, i32, i32
  }
  func.func @transform_2(%arg0: i32) -> (i32, i32) {
    %c0_i32 = arith.constant 0 : i32
    %c0_i32_0 = arith.constant 0 : i32
    %c0_i32_1 = arith.constant 0 : i32
    return %c0_i32, %c0_i32_0 : i32, i32
  }
  func.func @transform_3(%arg0: i32) -> (i32, i32) {
    %c0_i32 = arith.constant 0 : i32
    %c0_i32_0 = arith.constant 0 : i32
    %c0_i32_1 = arith.constant 0 : i32
    return %c0_i32, %c0_i32_0 : i32, i32
  }
  func.func @transform_4(%arg0: i32) -> (i32, i32, i32) {
    %c0_i32 = arith.constant 0 : i32
    %c0_i32_0 = arith.constant 0 : i32
    %c0_i32_1 = arith.constant 0 : i32
    %c0_i32_2 = arith.constant 0 : i32
    return %c0_i32, %c0_i32_0, %c0_i32_1 : i32, i32, i32
  }
  func.func @transform_5(%arg0: i32) -> (i32, i32) {
    %c0_i32 = arith.constant 0 : i32
    %c0_i32_0 = arith.constant 0 : i32
    %c0_i32_1 = arith.constant 0 : i32
    return %c0_i32, %c0_i32_0 : i32, i32
  }
  func.func @transform_6(%arg0: i32) -> (i32, i32) {
    %c0_i32 = arith.constant 0 : i32
    %c0_i32_0 = arith.constant 0 : i32
    %c0_i32_1 = arith.constant 0 : i32
    return %c0_i32, %c0_i32_0 : i32, i32
  }
  func.func @transform_7(%arg0: i32) -> (i32, i32, i32) {
    %c0_i32 = arith.constant 0 : i32
    %c0_i32_0 = arith.constant 0 : i32
    %c0_i32_1 = arith.constant 0 : i32
    return %arg0, %c0_i32, %c0_i32_0 : i32, i32, i32
  }
}

</mosaic_0001>

<bundles_post_ra>
// kernel: conv_encoder_forward.1
= control target key start
LH: loop header
LB: loop body
LE: loop exit
PB: predicated region body
PF: predicated region fallthrough
CT: control target
= control target key end

     0   :  { %s1300_s24 = smov 0   ;;  %s1404_s0 = inlined_call_operand.vmem [shape: f32[2,72,4], index: 0, kind: input, shape index: {}]   ;;  %s1405_s1 = inlined_call_operand.vmem [shape: f32[3,4,8], index: 1, kind: input, shape index: {}]   ;;  %s1406_s2 = inlined_call_operand.vmem [shape: f32[1,8], index: 2, kind: input, shape index: {}]   ;;  %s1407_s3 = inlined_call_operand.vmem [shape: f32[24,32], index: 3, kind: input, shape index: {}]   ;;  %s1408_s4 = inlined_call_operand.vmem [shape: f32[3,8,16], index: 4, kind: input, shape index: {}]   ;;  %s1409_s5 = inlined_call_operand.vmem [shape: f32[1,16], index: 5, kind: input, shape index: {}]   ;;  %s1410_s6 = inlined_call_operand.vmem [shape: f32[3,8], index: 6, kind: input, shape index: {}]   ;;  %s1411_s7 = inlined_call_operand.vmem [shape: f32[2,3,16], index: 7, kind: output, shape index: {}]  }
   0x1 LB: > { %s1100_s25 = sadd.s32 4294967295, %s1256_s24   ;;  %p1104_p0 = scmp.ge.s32.totalorder %s1256_s24, 1  ;;  %s1256_s24 = sphi %s1300_s24, %s17_s24  }
   0x2   : > { %p237_p1 = scmp.lt.s32.totalorder %s1256_s24, 3 }
   0x4   : > { %p238_p2 = pnand %p1104_p0, %p237_p1 }
   0x5   : > { %p268_p3 = scmp.lt.s32.totalorder (!%p238_p2), %s1100_s25, 1 }
   0x6   : > { %241 = sbr.rel (%p238_p2) target bundleno = 848 (0x350), region = 48 }
   0xb   : > { %v1114_v0 = vld [vmem:[%s1405_s1 + $0x4] sm:$0xf]  ;;  %vm308_vm0 = vcmask 1043456   ;;  %v284_v1 = vld [vmem:[%s1405_s1] sm:$0xf]  ;;  %s1413_s25 = smov (!%p268_p3, %s1100_s25), 1 }
   0xc   : > { %1178 = vmatprep.subr.msk.mxu0 %vm308_vm0, %v1114_v0  ;;  %1186 = vmatprep.subr.msk.mxu1 %vm308_vm0, %v284_v1  ;;  %v1129_v2 = vld [vmem:[%s1405_s1 + $0x8] sm:$0xf]  ;;  %s1239_s9 = smul.u32 72, %s1413_s25  ;;  %vm295_vm1 = vcmask 31744   ;;  %v1258_v15 = vmov 0.0   ;;  %vm1259_vm2 = vmmov 0  }
   0xd   : > { %1179 = vmatpush3.msk.msra.mxu0 %vm308_vm0, %v1114_v0  ;;  %1187 = vmatpush3.msk.msra.mxu1 %vm308_vm0, %v284_v1  ;;  %v1135_v30 = vld [vmem:[%s1406_s2] ss:$0 sm:$0xff]  ;;  %vm633_vm3 = vcmask 261120   ;;  %v631_v50 = vld [vmem:[%s1407_s3 + $0x8] sm:$0xff]  ;;  %v632_v51 = vld [vmem:[%s1407_s3 + $0x10] sm:$0xff]  ;;  %vm726_vm4 = vcmask 64512  }
   0xe   : > { %1194 = vmatprep.subr.msk.mxu0 %vm308_vm0, %v1129_v2  ;;  %s272_s12 = scalar_lea.vmem %s1404_s0, %s1239_s9  ;;  %1202 = vmatprep.subr.mxu1 %v1258_v15  ;;  %v630_v49 = vld [vmem:[%s1407_s3] sm:$0xff]  ;;  %v1139_v52 = vld [vmem:[%s1408_s4 + $0x8] sm:$0xff]  ;;  %v1142_v53 = vld [vmem:[%s1408_s4 + $0x10] sm:$0xff]  ;;  %s1106_s10 = sshll.u32 %s1413_s25, 2  ;;  %vm1045_vm5 = vcmask 124928  }
   0xf   : > { %v1110_v3 = vld [vmem:[%s272_s12 + $0x1] ss:$2 sm:$0xff]  ;;  %v277_v4 = vld [vmem:[%s272_s12] ss:$2 sm:$0xff]  ;;  %v1111_v5 = vld [vmem:[%s272_s12 + $0x11] ss:$2 sm:$0xff]  ;;  %s276_s13 = scalar_lea.vmem %s1411_s7, %s1106_s10 }
  0x10   : > { %1180 = vmatprep.mubr.msk.f32.mxu0 %vm295_vm1, %v1110_v3  ;;  %1188 = vmatprep.mubr.msk.f32.mxu1 %vm295_vm1, %v277_v4  ;;  %v1107_v6 = vld [vmem:[%s272_s12 + $0x10] ss:$2 sm:$0xff]  ;;  %v1112_v7 = vld [vmem:[%s272_s12 + $0x21] ss:$2 sm:$0xff]  ;;  %v1108_v8 = vld [vmem:[%s272_s12 + $0x20] ss:$2 sm:$0xff] }
  0x11   : > { %1181 = vmatmul.mubr.msk.f32.vlgmr.msra.gmra.mxu0 %vm295_vm1, %v1111_v5  ;;  %1189 = vmatmul.mubr.msk.f32.vlgmr.msra.gmra.mxu1 %vm295_vm1, %v1107_v6  ;;  %v1113_v9 = vld [vmem:[%s272_s12 + $0x31] ss:$2 sm:$0xff]  ;;  %v1109_v10 = vld [vmem:[%s272_s12 + $0x30] ss:$2 sm:$0xff]  ;;  %v731_v63 = vld [vmem:[%s1408_s4] sm:$0xff] }
  0x12   : > { %1183 = vmatprep.mubr.msk.f32.mxu0 %vm295_vm1, %v1112_v7  ;;  %1191 = vmatprep.mubr.msk.f32.mxu1 %vm295_vm1, %v1108_v8  ;;  %v1125_v11 = vld [vmem:[%s272_s12 + $0x2] ss:$2 sm:$0xff]  ;;  %v1126_v12 = vld [vmem:[%s272_s12 + $0x12] ss:$2 sm:$0xff] }
  0x13   : > { %1195 = vmatpush3.msk.msra.mxu0 %vm308_vm0, %v1129_v2  ;;  %v1127_v13 = vld [vmem:[%s272_s12 + $0x22] ss:$2 sm:$0xff]  ;;  %v1128_v14 = vld [vmem:[%s272_s12 + $0x32] ss:$2 sm:$0xff] }
  0x14   : > { %1219 = vmatprep.subr.mxu0 %v1258_v15  ;;  %v1144_v8 = vld [vmem:[%s1409_s5] ss:$0 sm:$0xff] }
  0x15   : > { %1184 = vmatmul.mubr.msk.f32.gmra.mxu0 %vm295_vm1, %v1113_v9  ;;  %1192 = vmatmul.mubr.msk.f32.gmra.mxu1 %vm295_vm1, %v1109_v10 }
  0x16   : > { %1196 = vmatprep.mubr.msk.f32.mxu0 %vm295_vm1, %v1125_v11  ;;  %1210 = vmatprep.mubr.msk.f32.mxu1 %vm1259_vm2, %v1258_v15 }
  0x19   : > { %1197 = vmatmul.mubr.msk.f32.vlgmr.msra.gmra.mxu0 %vm295_vm1, %v1126_v12 }
  0x1a   : > { %1199 = vmatprep.mubr.msk.f32.mxu0 %vm295_vm1, %v1127_v13  ;;  %1220 = vmatpush3.msra.mxu0 %v1139_v52 }
  0x1b   : > { %1224 = vmatprep.subr.mxu0 %v1258_v15 }
  0x1d   : > { %1200 = vmatmul.mubr.msk.f32.gmra.mxu0 %vm295_vm1, %v1128_v14 }
  0x1e   : > { %1221 = vmatprep.mubr.msk.f32.mxu0 %vm1259_vm2, %v1258_v15 }
  0xd1   : > { %v1182_v16 = vpop.f32.mrf.mxu0  ;;  %v1190_v17 = vpop.f32.mrf.mxu1 }
  0xd2   : > { %v484_v24 = vadd.f32 %v1190_v17, %v1182_v16 }
  0xd3   : > { %v378_v18 = vpop.f32.mrf.mxu0  ;;  %v478_v19 = vpop.f32.mrf.mxu1 }
  0xd4   : > { %v479_v27 = vadd.f32 %v478_v19, %v378_v18 }
  0xd5   : > { %v1185_v20 = vpop.f32.mrf.mxu0  ;;  %v1193_v21 = vpop.f32.mrf.mxu1 }
  0xd6   : > { %v494_v28 = vadd.f32 %v1193_v21, %v1185_v20 }
  0xd7   : > { %v388_v22 = vpop.f32.mrf.mxu0  ;;  %v488_v25 = vpop.f32.mrf.mxu1 }
  0xd8   : > { %v489_v32 = vadd.f32 %v488_v25, %v388_v22 }
  0xd9   : > { %v1198_v23 = vpop.f32.mrf.mxu0 }
  0xda   : > { %v608_v29 = vadd.f32 %v1198_v23, %v484_v24 }
  0xdb   : > { %v588_v26 = vpop.f32.mrf.mxu0 }
  0xdc   : > { %v607_v33 = vadd.f32 %v588_v26, %v479_v27  ;;  %v619_v36 = vadd.f32 %v1135_v30, %v608_v29 }
  0xdd   : > { %v1201_v31 = vpop.f32.mrf.mxu0 }
  0xde   : > { %v610_v34 = vadd.f32 %v1201_v31, %v494_v28  ;;  %v618_v39 = vadd.f32 %v1135_v30, %v607_v33  ;;  %v623_v42 = vmul.f32 0.01, %v619_v36 }
  0xdf   : > { %v598_v35 = vpop.f32.mrf.mxu0 }
  0xe0   : > { %v621_v37 = vadd.f32 %v1135_v30, %v610_v34  ;;  %v609_v38 = vadd.f32 %v598_v35, %v489_v32  ;;  %v622_v45 = vmul.f32 0.01, %v618_v39  ;;  %v627_v47 = vmax.f32 %v619_v36, %v623_v42 }
  0xe2   : > { %v625_v40 = vmul.f32 0.01, %v621_v37  ;;  %v620_v41 = vadd.f32 %v1135_v30, %v609_v38  ;;  %v626_v48 = vmax.f32 %v618_v39, %v622_v45 }
  0xe4   : > { %v629_v43 = vmax.f32 %v621_v37, %v625_v40  ;;  %v624_v44 = vmul.f32 0.01, %v620_v41 }
  0xe6   : > { %v628_v46 = vmax.f32 %v620_v41, %v624_v44  ;;  %1203 = vmatpush3.msra.mxu1 %v629_v43 }
  0xe7   : > { %1204 = vmatprep.subr.mxu1 %v1258_v15 }
  0xe8   : > { %1205 = vmatpush3.msra.mxu1 %v628_v46 }
  0xe9   : > { %1206 = vmatprep.subr.mxu1 %v1258_v15 }
  0xea   : > { %1207 = vmatpush3.msra.mxu1 %v627_v47 }
  0xeb   : > { %1208 = vmatprep.subr.mxu1 %v1258_v15 }
  0xec   : > { %1209 = vmatpush3.msra.mxu1 %v626_v48 }
  0xed   : > { %1211 = vmatmul.mubr.msk.f32.vlgmr.msra.gmra.mxu1 %vm633_vm3, %v630_v49  ;;  %1229 = vmatprep.subr.mxu1 %v1258_v15 }
  0xee   : > { %1213 = vmatprep.mubr.msk.f32.mxu1 %vm1259_vm2, %v1258_v15  ;;  %1230 = vmatpush3.msra.mxu1 %v1142_v53 }
  0xf1   : > { %1214 = vmatmul.mubr.msk.f32.gmra.mxu1 %vm633_vm3, %v631_v50 }
  0xf2   : > { %1216 = vmatprep.mubr.msk.f32.mxu1 %vm1259_vm2, %v1258_v15 }
  0xf5   : > { %1217 = vmatmul.mubr.msk.f32.gmra.mxu1 %vm633_vm3, %v632_v51 }
  0xf6   : > { %1231 = vmatprep.mubr.msk.f32.mxu1 %vm1259_vm2, %v1258_v15 }
 0x1ad   : > { %v709_v54 = vpop.f32.mrf.mxu1 }
 0x1ae   : > { %v723_v55 = vmul.f32 0.33333334, %v709_v54 }
 0x1af   : > { %v1212_v56 = vpop.f32.mrf.mxu1 }
 0x1b0   : > { %727 = vst.msk [vmem:[#allocation2] sm:$0xff] %vm726_vm4, %v723_v55 }
 0x1b1   : > { %v714_v57 = vpop.f32.mrf.mxu1 }
 0x1b2   : > { %v724_v58 = vmul.f32 0.33333334, %v714_v57 }
 0x1b3   : > { %v1215_v59 = vpop.f32.mrf.mxu1 }
 0x1b4   : > { %728 = vst.msk [vmem:[#allocation2 + $0x8] sm:$0xff] %vm726_vm4, %v724_v58 }
 0x1b5   : > { %v719_v60 = vpop.f32.mrf.mxu1 }
 0x1b6   : > { %v725_v61 = vmul.f32 0.33333334, %v719_v60 }
 0x1b7   : > { %v1218_v62 = vpop.f32.mrf.mxu1 }
 0x1b8   : > { %729 = vst.msk [vmem:[#allocation2 + $0x10] sm:$0xff] %vm726_vm4, %v725_v61 }
 0x1bb   : > { %v733_v0 = vld [vmem:[#allocation2 + $0x1] ss:$2 sm:$0xff]  ;;  %v730_v1 = vld [vmem:[#allocation2] ss:$2 sm:$0xff] }
 0x1bc   : > { %1222 = vmatmul.mubr.msk.f32.vlgmr.msra.gmra.mxu0 %vm726_vm4, %v733_v0 }
 0x1bd   : > { %1225 = vmatpush3.msra.mxu0 %v731_v63  ;;  %1226 = vmatprep.mubr.msk.f32.mxu0 %vm1259_vm2, %v1258_v15 }
 0x1be   : > { %1234 = vmatprep.subr.mxu0 %v1258_v15 }
 0x1bf   : > { %v883_v2 = vld [vmem:[#allocation2 + $0x2] ss:$2 sm:$0xff] }
 0x1c0   : > { %1227 = vmatmul.mubr.msk.f32.vlgmr.msra.gmra.mxu0 %vm726_vm4, %v730_v1  ;;  %1232 = vmatmul.mubr.msk.f32.vlgmr.msra.gmra.mxu1 %vm726_vm4, %v883_v2 }
 0x1c1   : > { %1236 = vmatprep.mubr.msk.f32.mxu0 %vm1259_vm2, %v1258_v15  ;;  %v970_v15 = vld [vmem:[%s1410_s6] sm:$0x7] }
 0x27c   : > { %v805_v3 = vpop.f32.mrf.mxu0 }
 0x27e   : > { %v1223_v4 = vpop.f32.mrf.mxu0 }
 0x280   : > { %v878_v5 = vpop.f32.mrf.mxu0  ;;  %v955_v6 = vpop.f32.mrf.mxu1 }
 0x281   : > { %v879_v7 = vadd.f32 %v878_v5, %v805_v3 }
 0x282   : > { %v1228_v9 = vpop.f32.mrf.mxu0  ;;  %v1233_v10 = vpop.f32.mrf.mxu1 }
 0x283   : > { %v959_v11 = vadd.f32 %v955_v6, %v879_v7 }
 0x285   : > { %v967_v12 = vadd.f32 %v1144_v8, %v959_v11 }
 0x287   : > { %v968_v13 = vmul.f32 0.01, %v967_v12 }
 0x289   : > { %v969_v14 = vmax.f32 %v967_v12, %v968_v13 }
 0x28b   : > { %1235 = vmatpush3.msra.mxu0 %v969_v14 }
 0x28c   : > { %1237 = vmatmul.mubr.msk.f32.vlgmr.msra.gmra.mxu0 %vm726_vm4, %v970_v15 }
 0x34c   : > { %v1040_v16 = vpop.f32.mrf.mxu0 }
 0x34d   : > { %v1044_v17 = vmul.f32 0.33333334, %v1040_v16 }
 0x34e   : > { %v1238_v18 = vpop.f32.mrf.mxu0 }
 0x34f   : > { %1046 = vst.msk [vmem:[%s276_s13] sm:$0x7] %vm1045_vm5, %v1044_v17 }
 0x350 PF: > { %s17_s24 = sadd.s32 1, %s1256_s24  }
 0x351   : > { %p14_p4 = scmp.ge.s32.totalorder %s17_s24, 4  }
 0x353   :  { %16 = sbr.rel (!%p14_p4) target bundleno = 1 (0x1), region = 95 }

</bundles_post_ra>
